<compile_context>
chip_gen: v7x
topology: tpu7x:2x2x1
jax: 0.10.0
libtpu: 0.0.40
codegen_flags: <defaults>
</compile_context>

<pallas_src>
import functools

import jax
import jax.numpy as jnp
from jax import lax
from jax.experimental import pallas as pl
from jax.experimental.pallas import tpu as pltpu


def _mlp_kernel(x_ref, w_in_ref, b_in_ref, w_h_ref, b_h_ref, w_out_ref, b_out_ref,
                o_ref, *, n_layer):
    # Input layer: bf16 MXU matmul, f32 accumulate, f32 bias + ReLU.
    h = jnp.dot(x_ref[...].astype(jnp.bfloat16), w_in_ref[...],
                preferred_element_type=jnp.float32)
    h = jnp.maximum(h + b_in_ref[...], 0.0)

    # Hidden layers: the PyTorch module applies ONE shared nn.Linear n_layer times,
    # so we loop over a single resident (H, H) weight instead of an (L, H, H) stack.
    w_h = w_h_ref[...]
    b_h = b_h_ref[...]

    def body(_, h):
        h = jnp.dot(h.astype(jnp.bfloat16), w_h, preferred_element_type=jnp.float32)
        return jnp.maximum(h + b_h, 0.0)

    # fori_loop bounds vreg live ranges; fully unroll only when L is small.
    h = lax.fori_loop(0, n_layer, body, h, unroll=(n_layer <= 8))

    # Output layer (no activation). Output block is lane-dense (padded to 128 lanes).
    out = jnp.dot(h.astype(jnp.bfloat16), w_out_ref[...],
                  preferred_element_type=jnp.float32)
    o_ref[...] = (out + b_out_ref[...]).astype(o_ref.dtype)


def _choose_tile_b(B):
    """Largest MXU-friendly batch tile (<=256) that divides B, preferring >=2 grid
    steps so both v7x TensorCores get work."""
    assert B % 8 == 0, "batch must be a multiple of 8"
    tile = min(B, 256)
    if B // tile < 2 and B >= 16:
        tile = max(8, (B // 2) // 8 * 8)
    while B % tile != 0:
        tile -= 8
    return tile


def mlp_forward(x, params, *, n_layer, tile_b=None):
    """Fused MLP forward. x: (B, n_feature) float32. Weights bf16, biases f32."""
    w_in, b_in, w_h, b_h, w_out, b_out = params
    B, F = x.shape
    H = w_in.shape[1]
    O = w_out.shape[1]

    if tile_b is None:
        tile_b = _choose_tile_b(B)
    assert B % tile_b == 0

    # Lane-dense output: pad the last layer's columns to a multiple of 128 so the
    # output writes are full (unmasked) vector stores; slice the padding off after.
    O_pad = pl.cdiv(max(O, 1), 128) * 128
    if O_pad != O:
        w_out_p = jnp.pad(w_out, ((0, 0), (0, O_pad - O)))
        b_out_p = jnp.pad(b_out, ((0, 0), (0, O_pad - O)))
    else:
        w_out_p, b_out_p = w_out, b_out

    grid = (B // tile_b,)
    kernel = functools.partial(_mlp_kernel, n_layer=n_layer)

    # VMEM budget: every BlockSpec input is double-buffered by default.
    w_bytes = ((F * H + H * H + H * O_pad) * w_in.dtype.itemsize
               + (2 * H + O_pad) * 4)                      # bf16 weights + f32 biases
    act_bytes = (tile_b * F + tile_b * O_pad) * 4          # streamed x / out tiles
    vmem_limit = int(min(64 << 20,                         # v7x physical ceiling
                         max(32 << 20, 2 * (w_bytes + act_bytes) + (8 << 20))))

    out_p = pl.pallas_call(
        kernel,
        out_shape=jax.ShapeDtypeStruct((B, O_pad), jnp.float32),
        grid_spec=pltpu.PrefetchScalarGridSpec(
            num_scalar_prefetch=0,
            grid=grid,
            in_specs=[
                pl.BlockSpec((tile_b, F), lambda i: (i, 0)),   # x tile (streamed)
                # Weights/biases: constant block index -> fetched once, kept resident.
                # TODO(synk): add pipeline_mode=pl.Buffered(1) on these constant specs
                # when L*H*H grows large enough to pressure v7x's 64 MiB VMEM.
                pl.BlockSpec((F, H), lambda i: (0, 0)),        # W_in   (bf16)
                pl.BlockSpec((1, H), lambda i: (0, 0)),        # b_in   (f32)
                pl.BlockSpec((H, H), lambda i: (0, 0)),        # W_h    (bf16, shared)
                pl.BlockSpec((1, H), lambda i: (0, 0)),        # b_h    (f32, shared)
                pl.BlockSpec((H, O_pad), lambda i: (0, 0)),    # W_out  (bf16, padded)
                pl.BlockSpec((1, O_pad), lambda i: (0, 0)),    # b_out  (f32, padded)
            ],
            out_specs=pl.BlockSpec((tile_b, O_pad), lambda i: (i, 0)),
        ),
        compiler_params=pltpu.CompilerParams(
            dimension_semantics=("parallel",),
            vmem_limit_bytes=vmem_limit,
        ),
    )(x, w_in, b_in, w_h, b_h, w_out_p, b_out_p)

    return out_p[:, :O]


def init_params(key, n_feature, n_hidden, n_output, n_layer):
    """Deterministic init mimicking nn.Linear (uniform +/- 1/sqrt(fan_in)).
    Weights stored in bf16 (MXU dtype), biases in f32."""
    del n_layer  # the hidden Linear is shared; no per-layer weights
    ks = jax.random.split(key, 6)

    def lin(kw, kb, fan_in, fan_out):
        bound = 1.0 / jnp.sqrt(jnp.float32(fan_in))
        w = jax.random.uniform(kw, (fan_in, fan_out), jnp.float32, -bound, bound)
        b = jax.random.uniform(kb, (1, fan_out), jnp.float32, -bound, bound)
        return w.astype(jnp.bfloat16), b

    w_in, b_in = lin(ks[0], ks[1], n_feature, n_hidden)
    w_h, b_h = lin(ks[2], ks[3], n_hidden, n_hidden)       # one shared hidden Linear
    w_out, b_out = lin(ks[4], ks[5], n_hidden, n_output)
    return (w_in, b_in, w_h, b_h, w_out, b_out)


def mlp_reference(x, params, n_layer):
    """Pure-JAX reference with the same bf16-matmul / f32-accumulate numerics."""
    w_in, b_in, w_h, b_h, w_out, b_out = params

    def lin(h, w, b):
        return jnp.dot(h.astype(jnp.bfloat16), w,
                       preferred_element_type=jnp.float32) + b

    h = jnp.maximum(lin(x, w_in, b_in), 0.0)
    for _ in range(n_layer):
        h = jnp.maximum(lin(h, w_h, b_h), 0.0)
    return lin(h, w_out, b_out)


if __name__ == "__main__":
    n_feature, n_hidden, n_output, n_layer = 16, 128, 4, 3
    batch = 256   # -> tile_b=128, grid=(2,): fills MXU M and feeds both v7x cores

    key = jax.random.PRNGKey(0)
    kx, kp = jax.random.split(key)
    x = jax.random.normal(kx, (batch, n_feature), jnp.float32)
    params = init_params(kp, n_feature, n_hidden, n_output, n_layer)

    out = mlp_forward(x, params, n_layer=n_layer)
    out = jax.block_until_ready(out)

    ref = mlp_reference(x, params, n_layer)
    assert out.shape == (batch, n_output)
    assert jnp.allclose(out, ref, atol=1e-3, rtol=1e-3), "mismatch vs reference"

    print("KERNEL_OK")
</pallas_src>

<mosaic_0001>
module attributes {stable_mosaic.version = 11 : i64} {
  func.func @_mlp_kernel(%arg0: i32, %arg1: memref<128x16xf32, #tpu.memory_space<vmem>>, %arg2: memref<16x128xbf16, #tpu.memory_space<vmem>>, %arg3: memref<1x128xf32, #tpu.memory_space<vmem>>, %arg4: memref<128x128xbf16, #tpu.memory_space<vmem>>, %arg5: memref<1x128xf32, #tpu.memory_space<vmem>>, %arg6: memref<128x128xbf16, #tpu.memory_space<vmem>>, %arg7: memref<1x128xf32, #tpu.memory_space<vmem>>, %arg8: memref<128x128xf32, #tpu.memory_space<vmem>>) attributes {dimension_semantics = [#tpu.dimension_semantics<parallel>], iteration_bounds = array<i64: 2>, scalar_prefetch = 0 : i64, scratch_operands = 0 : i64, tpu.core_type = #tpu.core_type<tc>, window_params = [{transform_indices = @transform_0, window_bounds = array<i64: 128, 16>}, {pipeline_mode = #tpu.pipeline_mode<synchronous>, transform_indices = @transform_1, window_bounds = array<i64: 16, 128>}, {pipeline_mode = #tpu.pipeline_mode<synchronous>, transform_indices = @transform_2, window_bounds = array<i64: 1, 128>}, {pipeline_mode = #tpu.pipeline_mode<synchronous>, transform_indices = @transform_3, window_bounds = array<i64: 128, 128>}, {pipeline_mode = #tpu.pipeline_mode<synchronous>, transform_indices = @transform_4, window_bounds = array<i64: 1, 128>}, {pipeline_mode = #tpu.pipeline_mode<synchronous>, transform_indices = @transform_5, window_bounds = array<i64: 128, 128>}, {pipeline_mode = #tpu.pipeline_mode<synchronous>, transform_indices = @transform_6, window_bounds = array<i64: 1, 128>}, {transform_indices = @transform_7, window_bounds = array<i64: 128, 128>}]} {
    %c0 = arith.constant 0 : index
    %c0_0 = arith.constant 0 : index
    %0 = vector.load %arg1[%c0, %c0_0] : memref<128x16xf32, #tpu.memory_space<vmem>>, vector<128x16xf32>
    %1 = arith.truncf %0 : vector<128x16xf32> to vector<128x16xbf16>
    %c0_1 = arith.constant 0 : index
    %c0_2 = arith.constant 0 : index
    %2 = vector.load %arg2[%c0_1, %c0_2] : memref<16x128xbf16, #tpu.memory_space<vmem>>, vector<16x128xbf16>
    %cst = arith.constant dense<0.000000e+00> : vector<128x128xf32>
    %3 = tpu.matmul %1, %2, %cst {dimension_numbers = #tpu.dot_dimension_numbers<[1], [0], [0], [1], [0, 0, 1, 1], [], []>} : vector<128x16xbf16>, vector<16x128xbf16>, vector<128x128xf32> -> vector<128x128xf32>
    %c0_3 = arith.constant 0 : index
    %c0_4 = arith.constant 0 : index
    %4 = vector.load %arg3[%c0_3, %c0_4] : memref<1x128xf32, #tpu.memory_space<vmem>>, vector<1x128xf32>
    %5 = vector.broadcast %4 : vector<1x128xf32> to vector<128x128xf32>
    %6 = arith.addf %3, %5 : vector<128x128xf32>
    %cst_5 = arith.constant 0.000000e+00 : f32
    %7 = vector.broadcast %cst_5 : f32 to vector<128x128xf32>
    %8 = arith.maximumf %6, %7 : vector<128x128xf32>
    %c0_6 = arith.constant 0 : index
    %c0_7 = arith.constant 0 : index
    %9 = vector.load %arg4[%c0_6, %c0_7] : memref<128x128xbf16, #tpu.memory_space<vmem>>, vector<128x128xbf16>
    %c0_8 = arith.constant 0 : index
    %c0_9 = arith.constant 0 : index
    %10 = vector.load %arg5[%c0_8, %c0_9] : memref<1x128xf32, #tpu.memory_space<vmem>>, vector<1x128xf32>
    %c0_i32 = arith.constant 0 : i32
    %11 = arith.truncf %8 : vector<128x128xf32> to vector<128x128xbf16>
    %cst_10 = arith.constant dense<0.000000e+00> : vector<128x128xf32>
    %12 = tpu.matmul %11, %9, %cst_10 {dimension_numbers = #tpu.dot_dimension_numbers<[1], [0], [0], [1], [0, 0, 1, 1], [], []>} : vector<128x128xbf16>, vector<128x128xbf16>, vector<128x128xf32> -> vector<128x128xf32>
    %13 = vector.broadcast %10 : vector<1x128xf32> to vector<128x128xf32>
    %14 = arith.addf %12, %13 : vector<128x128xf32>
    %cst_11 = arith.constant 0.000000e+00 : f32
    %15 = vector.broadcast %cst_11 : f32 to vector<128x128xf32>
    %16 = arith.maximumf %14, %15 : vector<128x128xf32>
    %c1_i32 = arith.constant 1 : i32
    %17 = arith.truncf %16 : vector<128x128xf32> to vector<128x128xbf16>
    %cst_12 = arith.constant dense<0.000000e+00> : vector<128x128xf32>
    %18 = tpu.matmul %17, %9, %cst_12 {dimension_numbers = #tpu.dot_dimension_numbers<[1], [0], [0], [1], [0, 0, 1, 1], [], []>} : vector<128x128xbf16>, vector<128x128xbf16>, vector<128x128xf32> -> vector<128x128xf32>
    %19 = vector.broadcast %10 : vector<1x128xf32> to vector<128x128xf32>
    %20 = arith.addf %18, %19 : vector<128x128xf32>
    %cst_13 = arith.constant 0.000000e+00 : f32
    %21 = vector.broadcast %cst_13 : f32 to vector<128x128xf32>
    %22 = arith.maximumf %20, %21 : vector<128x128xf32>
    %c2_i32 = arith.constant 2 : i32
    %23 = arith.truncf %22 : vector<128x128xf32> to vector<128x128xbf16>
    %cst_14 = arith.constant dense<0.000000e+00> : vector<128x128xf32>
    %24 = tpu.matmul %23, %9, %cst_14 {dimension_numbers = #tpu.dot_dimension_numbers<[1], [0], [0], [1], [0, 0, 1, 1], [], []>} : vector<128x128xbf16>, vector<128x128xbf16>, vector<128x128xf32> -> vector<128x128xf32>
    %25 = vector.broadcast %10 : vector<1x128xf32> to vector<128x128xf32>
    %26 = arith.addf %24, %25 : vector<128x128xf32>
    %cst_15 = arith.constant 0.000000e+00 : f32
    %27 = vector.broadcast %cst_15 : f32 to vector<128x128xf32>
    %28 = arith.maximumf %26, %27 : vector<128x128xf32>
    %29 = arith.truncf %28 : vector<128x128xf32> to vector<128x128xbf16>
    %c0_16 = arith.constant 0 : index
    %c0_17 = arith.constant 0 : index
    %30 = vector.load %arg6[%c0_16, %c0_17] : memref<128x128xbf16, #tpu.memory_space<vmem>>, vector<128x128xbf16>
    %cst_18 = arith.constant dense<0.000000e+00> : vector<128x128xf32>
    %31 = tpu.matmul %29, %30, %cst_18 {dimension_numbers = #tpu.dot_dimension_numbers<[1], [0], [0], [1], [0, 0, 1, 1], [], []>} : vector<128x128xbf16>, vector<128x128xbf16>, vector<128x128xf32> -> vector<128x128xf32>
    %c0_19 = arith.constant 0 : index
    %c0_20 = arith.constant 0 : index
    %32 = vector.load %arg7[%c0_19, %c0_20] : memref<1x128xf32, #tpu.memory_space<vmem>>, vector<1x128xf32>
    %33 = vector.broadcast %32 : vector<1x128xf32> to vector<128x128xf32>
    %34 = arith.addf %31, %33 : vector<128x128xf32>
    %c0_21 = arith.constant 0 : index
    %c0_22 = arith.constant 0 : index
    %35 = vector.load %arg8[%c0_21, %c0_22] : memref<128x128xf32, #tpu.memory_space<vmem>>, vector<128x128xf32>
    tpu.vector_store %arg8[%c0_21, %c0_22], %34 {strides = array<i32>} : memref<128x128xf32, #tpu.memory_space<vmem>>, vector<128x128xf32>,
    return
  }
  func.func @transform_0(%arg0: i32) -> (i32, i32) {
    %c0_i32 = arith.constant 0 : i32
    %c0_i32_0 = arith.constant 0 : i32
    return %arg0, %c0_i32 : i32, i32
  }
  func.func @transform_1(%arg0: i32) -> (i32, i32) {
    %c0_i32 = arith.constant 0 : i32
    %c0_i32_0 = arith.constant 0 : i32
    %c0_i32_1 = arith.constant 0 : i32
    return %c0_i32, %c0_i32_0 : i32, i32
  }
  func.func @transform_2(%arg0: i32) -> (i32, i32) {
    %c0_i32 = arith.constant 0 : i32
    %c0_i32_0 = arith.constant 0 : i32
    %c0_i32_1 = arith.constant 0 : i32
    return %c0_i32, %c0_i32_0 : i32, i32
  }
  func.func @transform_3(%arg0: i32) -> (i32, i32) {
    %c0_i32 = arith.constant 0 : i32
    %c0_i32_0 = arith.constant 0 : i32
    %c0_i32_1 = arith.constant 0 : i32
    return %c0_i32, %c0_i32_0 : i32, i32
  }
  func.func @transform_4(%arg0: i32) -> (i32, i32) {
    %c0_i32 = arith.constant 0 : i32
    %c0_i32_0 = arith.constant 0 : i32
    %c0_i32_1 = arith.constant 0 : i32
    return %c0_i32, %c0_i32_0 : i32, i32
  }
  func.func @transform_5(%arg0: i32) -> (i32, i32) {
    %c0_i32 = arith.constant 0 : i32
    %c0_i32_0 = arith.constant 0 : i32
    %c0_i32_1 = arith.constant 0 : i32
    return %c0_i32, %c0_i32_0 : i32, i32
  }
  func.func @transform_6(%arg0: i32) -> (i32, i32) {
    %c0_i32 = arith.constant 0 : i32
    %c0_i32_0 = arith.constant 0 : i32
    %c0_i32_1 = arith.constant 0 : i32
    return %c0_i32, %c0_i32_0 : i32, i32
  }
  func.func @transform_7(%arg0: i32) -> (i32, i32) {
    %c0_i32 = arith.constant 0 : i32
    %c0_i32_0 = arith.constant 0 : i32
    return %arg0, %c0_i32 : i32, i32
  }
}

</mosaic_0001>

<bundles_post_ra>
// kernel: tpu_custom_call.1
= control target key start
LH: loop header
LB: loop body
LE: loop exit
PB: predicated region body
PF: predicated region fallthrough
CT: control target
= control target key end

     0   :  { %12 = vsyncpa [#allocation3], 0  ;;  %s1928_s0 = inlined_call_operand.vmem [shape: f32[256,16], index: 0, kind: input, shape index: {}]   ;;  %s1929_s1 = inlined_call_operand.vmem [shape: bf16[16,128], index: 1, kind: input, shape index: {}]   ;;  %s1930_s2 = inlined_call_operand.vmem [shape: f32[1,128], index: 2, kind: input, shape index: {}]   ;;  %s1931_s3 = inlined_call_operand.vmem [shape: bf16[128,128], index: 3, kind: input, shape index: {}]   ;;  %s1932_s4 = inlined_call_operand.vmem [shape: f32[1,128], index: 4, kind: input, shape index: {}]   ;;  %s1933_s5 = inlined_call_operand.vmem [shape: bf16[128,128], index: 5, kind: input, shape index: {}]   ;;  %s1934_s6 = inlined_call_operand.vmem [shape: f32[1,128], index: 6, kind: input, shape index: {}]   ;;  %s1935_s7 = inlined_call_operand.hbm [shape: f32[256,128], index: 7, kind: output, shape index: {}]  }
   0x1   :  { %14 = vsyncpa [#allocation3 + $0x1], 0  ;;  %s1585_s24 = smov 0   ;;  %s1587_s25 = smov 0  }
   0x2   :  { %s1589_s26 = smov 0   ;;  %s1591_s27 = smov 0  }
   0x3 LB: > { %s1606_s28 = sadd.s32 4294967295, %s1540_s27   ;;  %s1160_s29 = sadd.s32 4294967294, %s1540_s27   ;;  %s1540_s27 = sphi %s1591_s27, %s1941_s27   ;;  %s1536_s26 = sphi %s1589_s26, %s1940_s26   ;;  %s1532_s25 = sphi %s1587_s25, %s1939_s25   ;;  %s1528_s24 = sphi %s1585_s24, %s1938_s24  }
   0x4   : > { %s1610_s30 = sadd.s32 1, %s1540_s27   ;;  %s179_s8 = sadd.s32 1, %s1536_s26 }
   0x5   : > { %s176_s9 = ssub.s32 %s1540_s27, %s1610_s30  ;;  %p189_p0 = scmp.ne.s32.totalorder %s1536_s26, %s1532_s25 }
   0x6   : > { %p177_p1 = scmp.eq.s32.totalorder %s176_s9, 0  ;;  %p190_p2 = scmp.eq.s32.totalorder %s1606_s28, 1 }
   0x7   : > { %p195_p3 = scmp.ne.s32.totalorder %s1532_s25, %s1528_s24  ;;  %p196_p4 = scmp.eq.s32.totalorder %s1160_s29, 1 }
   0x8   : > { %s1621_s10 = scalar_select %p177_p1, %s1536_s26, %s179_s8  }
   0x9   : > { %p1623_p5 = por %p190_p2, %p189_p0  ;;  %p1627_p6 = por %p196_p4, %p195_p3 }
   0xa   : > { %p1163_p7 = scmp.ge.s32.totalorder %s1540_s27, 1  ;;  %p241_p8 = scmp.lt.s32.totalorder %s1540_s27, 3 }
   0xc   : > { %p242_p9 = pnand %p1163_p7, %p241_p8 }
   0xd   : > { %v1461_v0 = vld [vmem:[%s1929_s1] sm:$0xff] (!%p242_p9)   ;;  %s1165_s15 = sshll.u32 (!%p242_p9), %s1606_s28, 4  ;;  %v1645_v2 = vld [vmem:[%s1931_s3 + $0x8] sm:$0xff] (!%p242_p9)   ;;  %v1659_v3 = vld [vmem:[%s1931_s3 + $0x10] sm:$0xff] (!%p242_p9)   ;;  %vm320_vm0 = vcmask (!%p242_p9), 130048   ;;  %s270_s14 = sand.u32 (!%p242_p9), 1, %s1532_s25  }
   0xe   : > { %245 = sbr.rel (%p242_p9) target bundleno = 1172 (0x494), region = 48  ;;  %p274_p10 = scmp.lt.s32.totalorder (!%p242_p9), %s1165_s15, 31  ;;  %1274 = vmatprep.subr.bf16.mxu0 (!%p242_p9), %v1461_v0  ;;  %v1640_v1 = vld [vmem:[%s1931_s3] sm:$0xff] (!%p242_p9)   ;;  %v1673_v13 = vld [vmem:[%s1931_s3 + $0x18] sm:$0xff] (!%p242_p9)   ;;  %v1693_v21 = vld [vmem:[%s1931_s3 + $0x28] sm:$0xff] (!%p242_p9)  }
   0xf   : > { %1275 = vmatpush3.bf16.msra.mxu0 (!%p242_p9), %v1461_v0  ;;  %1292 = vmatprep.subr.bf16.mxu1 (!%p242_p9), %v1640_v1  ;;  %v1684_v18 = vld [vmem:[%s1931_s3 + $0x20] sm:$0xff] (!%p242_p9)   ;;  %v1723_v31 = vld [vmem:[%s1931_s3 + $0x30] sm:$0xff] (!%p242_p9)   ;;  %v1732_v32 = vld [vmem:[%s1931_s3 + $0x38] sm:$0xff] (!%p242_p9)   ;;  %s1200_s19 = sshll.u32 (!%p242_p9), %s1606_s28, 11  ;;  %s1887_s28 = scalar_lea.sflag (!%p242_p9), [#allocation3], %s270_s14 }
  0x10   : > { %1324 = vmatprep.subr.bf16.mxu0 (!%p242_p9), %v1640_v1  ;;  %1293 = vmatpush3.bf16.msra.mxu1 (!%p242_p9), %v1640_v1  ;;  %v1742_v33 = vld [vmem:[%s1930_s2] ss:$0 sm:$0xff] (!%p242_p9)  ;;  %s1542_s8 = smov (!%p242_p9), [#allocation2]  }
  0x11   : > { %1294 = vmatprep.subr.bf16.mxu1 (!%p242_p9), %v1645_v2  ;;  %s1482_s9 = sshll.u32 (!%p242_p9), %s1542_s8, 4  ;;  %s1483_s9 = int_to_ptr.vmem [resolvable:$false] %s1482_s9 }
  0x12   : > { %s1484_s13 = scalar_lea.vmem (!%p242_p9), %s1483_s9, 4096 }
  0x14   : > { %1295 = vmatpush3.bf16.msra.mxu1 (!%p242_p9), %v1645_v2 }
  0x15   : > { %s1943_s15 = smov (!%p274_p10, %s1165_s15), 31  ;;  %1296 = vmatprep.subr.bf16.mxu1 %v1659_v3 }
  0x16   : > { %s1166_s20 = sshll.u32 %s1943_s15, 3  ;;  %s1164_s15 = sshll.u32 %s270_s14, 7 }
  0x17   : > { %s1653_s23 = scalar_lea.vmem %s1928_s0, %s1166_s20  ;;  %s1858_s18 = scalar_lea.vmem [#allocation2], %s1164_s15 }
  0x18   : > { %v281_v4 = vld [vmem:[%s1653_s23] sm:$0xff]  ;;  %v282_v5 = vld [vmem:[%s1653_s23 + $0x8] sm:$0xff]  ;;  %v283_v6 = vld [vmem:[%s1653_s23 + $0x10] sm:$0xff]  ;;  %1297 = vmatpush3.bf16.msra.mxu1 %v1659_v3  ;;  %s1098_s20 = sshll.u32 %s1858_s18, 4  ;;  %s1880_s20 = int_to_ptr.vmem [resolvable:$true] %s1098_s20 }
  0x19   : > { %v297_v7 = vpack.c.bf16 %v282_v5, %v281_v4  ;;  %v284_v8 = vld [vmem:[%s1653_s23 + $0x18] sm:$0xff]  ;;  %v285_v9 = vld [vmem:[%s1653_s23 + $0x20] sm:$0xff]  ;;  %v286_v10 = vld [vmem:[%s1653_s23 + $0x28] sm:$0xff]  ;;  %1298 = vmatprep.subr.bf16.mxu1 %v1673_v13  ;;  %s1478_s29 = scalar_lea.vmem %s1880_s20, 2048  ;;  %p1485_p0 = scmp.lt.s32.totalorder %s1880_s20, %s1483_s9 }
  0x1a   : > { %v298_v11 = vpack.c.bf16 %v284_v8, %v283_v6  ;;  %v299_v12 = vpack.c.bf16 %v286_v10, %v285_v9  ;;  %v287_v14 = vld [vmem:[%s1653_s23 + $0x30] sm:$0xff]  ;;  %v288_v15 = vld [vmem:[%s1653_s23 + $0x38] sm:$0xff]  ;;  %v289_v16 = vld [vmem:[%s1653_s23 + $0x40] sm:$0xff]  ;;  %p1479_p11 = scmp.ne.s32.totalorder %s1880_s20, %s1478_s29  ;;  %p1486_p1 = scmp.lt.s32.totalorder %s1484_s13, %s1478_s29 }
  0x1b   : > { %1276 = vmatprep.mubr.msk.bf16.mxu0 %vm320_vm0, %v297_v7  ;;  %v290_v17 = vld [vmem:[%s1653_s23 + $0x48] sm:$0xff]  ;;  %v300_v19 = vpack.c.bf16 %v288_v15, %v287_v14  ;;  %v291_v22 = vld [vmem:[%s1653_s23 + $0x50] sm:$0xff]  ;;  %v292_v23 = vld [vmem:[%s1653_s23 + $0x58] sm:$0xff] }
  0x1c   : > { %1277 = vmatmul.mubr.msk.bf16.vlgmr.msra.gmra.mrb[0].mxu0 %vm320_vm0, %v298_v11  ;;  %v301_v20 = vpack.c.bf16 %v290_v17, %v289_v16  ;;  %1299 = vmatpush3.bf16.msra.mxu1 %v1673_v13  ;;  %v293_v24 = vld [vmem:[%s1653_s23 + $0x60] sm:$0xff]  ;;  %v294_v25 = vld [vmem:[%s1653_s23 + $0x68] sm:$0xff]  ;;  %v302_v26 = vpack.c.bf16 %v292_v23, %v291_v22  ;;  %v295_v28 = vld [vmem:[%s1653_s23 + $0x70] sm:$0xff]  ;;  %p1480_p12 = pnand %p1479_p11, %p1623_p5  ;;  %p1487_p2 = por %p1486_p1, %p1485_p0 }
  0x1d   : > { %1280 = vmatprep.mubr.msk.bf16.mxu0 %vm320_vm0, %v299_v12  ;;  %1325 = vmatpush3.bf16.msra.mxu0 %v1640_v1  ;;  %v303_v27 = vpack.c.bf16 %v294_v25, %v293_v24  ;;  %v296_v29 = vld [vmem:[%s1653_s23 + $0x78] sm:$0xff]  ;;  %s1878_s23 = scalar_lea.hbm %s1935_s7, %s1200_s19 }
  0x1e   : > { %1326 = vmatprep.subr.bf16.mxu0 %v1645_v2  ;;  %1300 = vmatprep.subr.bf16.mxu1 %v1684_v18  ;;  %v304_v30 = vpack.c.bf16 %v296_v29, %v295_v28  ;;  %p1481_p13 = pneg %p1480_p12 }
  0x20   : > { %1301 = vmatpush3.bf16.msra.mxu1 %v1684_v18  ;;  %p1488_p3 = pnand %p1487_p2, %p1481_p13 }
  0x21   : > { %1327 = vmatpush3.bf16.msra.mxu0 %v1645_v2  ;;  %1302 = vmatprep.subr.bf16.mxu1 %v1693_v21 }
  0x22   : > { %1328 = vmatprep.subr.bf16.mxu0 %v1659_v3 }
  0x24   : > { %1281 = vmatmul.mubr.msk.bf16.gmra.mrb[4].mxu0 %vm320_vm0, %v300_v19  ;;  %1303 = vmatpush3.bf16.msra.mxu1 %v1693_v21 }
  0x25   : > { %1284 = vmatprep.mubr.msk.bf16.mxu0 %vm320_vm0, %v301_v20  ;;  %1329 = vmatpush3.bf16.msra.mxu0 %v1659_v3 }
  0x26   : > { %1330 = vmatprep.subr.bf16.mxu0 %v1673_v13  ;;  %1304 = vmatprep.subr.bf16.mxu1 %v1723_v31 }
  0x28   : > { %1305 = vmatpush3.bf16.msra.mxu1 %v1723_v31 }
  0x29   : > { %1331 = vmatpush3.bf16.msra.mxu0 %v1673_v13  ;;  %1306 = vmatprep.subr.bf16.mxu1 %v1732_v32 }
  0x2a   : > { %1332 = vmatprep.subr.bf16.mxu0 %v1684_v18 }
  0x2c   : > { %1285 = vmatmul.mubr.msk.bf16.gmra.mrb[8].mxu0 %vm320_vm0, %v302_v26  ;;  %1307 = vmatpush3.bf16.msra.mxu1 %v1732_v32 }
  0x2d   : > { %1288 = vmatprep.mubr.msk.bf16.mxu0 %vm320_vm0, %v303_v27  ;;  %1333 = vmatpush3.bf16.msra.mxu0 %v1684_v18 }
  0x2e   : > { %1334 = vmatprep.subr.bf16.mxu0 %v1693_v21  ;;  %1356 = vmatprep.subr.bf16.mxu1 %v1640_v1 }
  0x31   : > { %1335 = vmatpush3.bf16.msra.mxu0 %v1693_v21 }
  0x32   : > { %1336 = vmatprep.subr.bf16.mxu0 %v1723_v31 }
  0x34   : > { %1289 = vmatmul.mubr.msk.bf16.gmra.mrb[12].mxu0 %vm320_vm0, %v304_v30 }
  0x35   : > { %1337 = vmatpush3.bf16.msra.mxu0 %v1723_v31 }
  0x36   : > { %1338 = vmatprep.subr.bf16.mxu0 %v1732_v32 }
  0x39   : > { %1339 = vmatpush3.bf16.msra.mxu0 %v1732_v32 }
  0xef   : > { %v1278_v34 = vpop.f32.mrb[0].mxu0 }
  0xf0   : > { %v388_v35 = vadd.f32 %v1278_v34, %v1742_v33  ;;  %v379_v36 = vpop.f32.mrb[1].mxu0 }
  0xf1   : > { %v380_v37 = vadd.f32 %v1742_v33, %v379_v36  ;;  %v1279_v38 = vpop.f32.mrb[2].mxu0 }
  0xf2   : > { %v391_v39 = vadd.f32 %v1279_v38, %v1742_v33  ;;  %v382_v40 = vpop.f32.mrb[3].mxu0  ;;  %v444_v42 = vmax.f32 %v388_v35, 0.0 }
  0xf3   : > { %v383_v41 = vadd.f32 %v1742_v33, %v382_v40  ;;  %v442_v44 = vmax.f32 %v380_v37, 0.0 }
  0xf4   : > { %v445_v43 = vmax.f32 %v391_v39, 0.0 }
  0xf5   : > { %v443_v45 = vmax.f32 %v383_v41, 0.0 }
  0xf6   : > { %v476_v46 = vpack.c.bf16 %v445_v43, %v444_v42 }
  0xf7   : > { %v1282_v47 = vpop.f32.mrb[4].mxu0  ;;  %v475_v48 = vpack.c.bf16 %v443_v45, %v442_v44 }
  0xf8   : > { %v404_v49 = vadd.f32 %v1282_v47, %v1742_v33  ;;  %v395_v50 = vpop.f32.mrb[5].mxu0 }
  0xf9   : > { %v396_v51 = vadd.f32 %v1742_v33, %v395_v50  ;;  %v1283_v52 = vpop.f32.mrb[6].mxu0  ;;  %1308 = vmatprep.mubr.bf16.mxu1 %v475_v48 }
  0xfa   : > { %v407_v53 = vadd.f32 %v1283_v52, %v1742_v33  ;;  %v398_v54 = vpop.f32.mrb[7].mxu0  ;;  %1309 = vmatmul.mubr.bf16.vlgmr.msra.gmra.mrb[0].mxu1 %v476_v46  ;;  %v448_v56 = vmax.f32 %v404_v49, 0.0 }
  0xfb   : > { %v399_v55 = vadd.f32 %v1742_v33, %v398_v54  ;;  %1357 = vmatpush3.bf16.msra.mxu1 %v1640_v1  ;;  %v446_v58 = vmax.f32 %v396_v51, 0.0 }
  0xfc   : > { %v449_v57 = vmax.f32 %v407_v53, 0.0  ;;  %1358 = vmatprep.subr.bf16.mxu1 %v1645_v2 }
  0xfd   : > { %v447_v59 = vmax.f32 %v399_v55, 0.0 }
  0xfe   : > { %v478_v60 = vpack.c.bf16 %v449_v57, %v448_v56 }
  0xff   : > { %v477_v61 = vpack.c.bf16 %v447_v59, %v446_v58  ;;  %v1286_v62 = vpop.f32.mrb[8].mxu0  ;;  %1359 = vmatpush3.bf16.msra.mxu1 %v1645_v2 }
 0x100   : > { %v420_v63 = vadd.f32 %v1286_v62, %v1742_v33  ;;  %v411_v0 = vpop.f32.mrb[9].mxu0  ;;  %1360 = vmatprep.subr.bf16.mxu1 %v1659_v3 }
 0x101   : > { %v412_v4 = vadd.f32 %v1742_v33, %v411_v0  ;;  %v1287_v5 = vpop.f32.mrb[10].mxu0  ;;  %1312 = vmatprep.mubr.bf16.mxu1 %v477_v61 }
 0x102   : > { %v423_v1 = vadd.f32 %v1287_v5, %v1742_v33  ;;  %v414_v6 = vpop.f32.mrb[11].mxu0  ;;  %1313 = vmatmul.mubr.bf16.gmra.mrb[4].mxu1 %v478_v60  ;;  %v452_v8 = vmax.f32 %v420_v63, 0.0 }
 0x103   : > { %v415_v7 = vadd.f32 %v1742_v33, %v414_v6  ;;  %1361 = vmatpush3.bf16.msra.mxu1 %v1659_v3  ;;  %v450_v2 = vmax.f32 %v412_v4, 0.0 }
 0x104   : > { %v453_v9 = vmax.f32 %v423_v1, 0.0  ;;  %1362 = vmatprep.subr.bf16.mxu1 %v1673_v13 }
 0x105   : > { %v451_v10 = vmax.f32 %v415_v7, 0.0 }
 0x106   : > { %v480_v11 = vpack.c.bf16 %v453_v9, %v452_v8 }
 0x107   : > { %v479_v12 = vpack.c.bf16 %v451_v10, %v450_v2  ;;  %v1290_v14 = vpop.f32.mrb[12].mxu0  ;;  %1363 = vmatpush3.bf16.msra.mxu1 %v1673_v13 }
 0x108   : > { %v436_v15 = vadd.f32 %v1290_v14, %v1742_v33  ;;  %v427_v16 = vpop.f32.mrb[13].mxu0  ;;  %1364 = vmatprep.subr.bf16.mxu1 %v1684_v18 }
 0x109   : > { %v428_v17 = vadd.f32 %v1742_v33, %v427_v16  ;;  %v1291_v19 = vpop.f32.mrb[14].mxu0  ;;  %1316 = vmatprep.mubr.bf16.mxu1 %v479_v12 }
 0x10a   : > { %v439_v3 = vadd.f32 %v1291_v19, %v1742_v33  ;;  %v430_v20 = vpop.f32.mrb[15].mxu0  ;;  %1317 = vmatmul.mubr.bf16.gmra.mrb[8].mxu1 %v480_v11  ;;  %v456_v23 = vmax.f32 %v436_v15, 0.0 }
 0x10b   : > { %v431_v22 = vadd.f32 %v1742_v33, %v430_v20  ;;  %1365 = vmatpush3.bf16.msra.mxu1 %v1684_v18  ;;  %v454_v13 = vmax.f32 %v428_v17, 0.0  ;;  %v1778_v18 = vld [vmem:[%s1932_s4] ss:$0 sm:$0xff] }
 0x10c   : > { %v457_v24 = vmax.f32 %v439_v3, 0.0  ;;  %1366 = vmatprep.subr.bf16.mxu1 %v1693_v21 }
 0x10d   : > { %v455_v25 = vmax.f32 %v431_v22, 0.0  ;;  %v1470_v22 = vld [vmem:[%s1933_s5] sm:$0xff]  }
 0x10e   : > { %v482_v26 = vpack.c.bf16 %v457_v24, %v456_v23  ;;  %v1471_v23 = vld [vmem:[%s1933_s5 + $0x8] sm:$0xff]   ;;  %1388 = vmatprep.subr.bf16.mxu0 %v1470_v22  ;;  %v1472_v24 = vld [vmem:[%s1933_s5 + $0x10] sm:$0xff]  }
 0x10f   : > { %v481_v27 = vpack.c.bf16 %v455_v25, %v454_v13  ;;  %1367 = vmatpush3.bf16.msra.mxu1 %v1693_v21  ;;  %v1473_v13 = vld [vmem:[%s1933_s5 + $0x18] sm:$0xff]   ;;  %v1474_v25 = vld [vmem:[%s1933_s5 + $0x20] sm:$0xff]  }
 0x110   : > { %1368 = vmatprep.subr.bf16.mxu1 %v1723_v31 }
 0x111   : > { %1320 = vmatprep.mubr.bf16.mxu1 %v481_v27 }
 0x112   : > { %1321 = vmatmul.mubr.bf16.gmra.mrb[12].mxu1 %v482_v26  ;;  %v1475_v26 = vld [vmem:[%s1933_s5 + $0x28] sm:$0xff]  }
 0x113   : > { %1369 = vmatpush3.bf16.msra.mxu1 %v1723_v31 }
 0x114   : > { %1370 = vmatprep.subr.bf16.mxu1 %v1732_v32 }
 0x117   : > { %1371 = vmatpush3.bf16.msra.mxu1 %v1732_v32 }
 0x1cd   : > { %v1310_v28 = vpop.f32.mrb[0].mxu1 }
 0x1ce   : > { %v580_v29 = vadd.f32 %v1310_v28, %v1778_v18  ;;  %v571_v30 = vpop.f32.mrb[1].mxu1 }
 0x1cf   : > { %v572_v21 = vadd.f32 %v1778_v18, %v571_v30  ;;  %v1311_v33 = vpop.f32.mrb[2].mxu1 }
 0x1d0   : > { %v583_v34 = vadd.f32 %v1311_v33, %v1778_v18  ;;  %v574_v35 = vpop.f32.mrb[3].mxu1  ;;  %v636_v36 = vmax.f32 %v580_v29, 0.0 }
 0x1d1   : > { %v575_v31 = vadd.f32 %v1778_v18, %v574_v35  ;;  %v634_v32 = vmax.f32 %v572_v21, 0.0 }
 0x1d2   : > { %v637_v37 = vmax.f32 %v583_v34, 0.0 }
 0x1d3   : > { %v635_v38 = vmax.f32 %v575_v31, 0.0 }
 0x1d4   : > { %v651_v39 = vpack.c.bf16 %v637_v37, %v636_v36 }
 0x1d5   : > { %v650_v40 = vpack.c.bf16 %v635_v38, %v634_v32  ;;  %v1314_v41 = vpop.f32.mrb[4].mxu1 }
 0x1d6   : > { %v596_v42 = vadd.f32 %v1314_v41, %v1778_v18  ;;  %v587_v43 = vpop.f32.mrb[5].mxu1 }
 0x1d7   : > { %v588_v44 = vadd.f32 %v1778_v18, %v587_v43  ;;  %v1315_v45 = vpop.f32.mrb[6].mxu1  ;;  %1340 = vmatprep.mubr.bf16.mxu0 %v650_v40 }
 0x1d8   : > { %v599_v46 = vadd.f32 %v1315_v45, %v1778_v18  ;;  %v590_v47 = vpop.f32.mrb[7].mxu1  ;;  %1341 = vmatmul.mubr.bf16.vlgmr.msra.gmra.mrb[16].mxu0 %v651_v39  ;;  %v640_v49 = vmax.f32 %v596_v42, 0.0 }
 0x1d9   : > { %v591_v48 = vadd.f32 %v1778_v18, %v590_v47  ;;  %v638_v51 = vmax.f32 %v588_v44, 0.0  ;;  %1389 = vmatpush3.bf16.msra.mxu0 %v1470_v22  ;;  %v1477_v22 = vld [vmem:[%s1933_s5 + $0x38] sm:$0xff]  }
 0x1da   : > { %v641_v50 = vmax.f32 %v599_v46, 0.0  ;;  %1390 = vmatprep.subr.bf16.mxu0 %v1471_v23 }
 0x1db   : > { %v639_v52 = vmax.f32 %v591_v48, 0.0 }
 0x1dc   : > { %v653_v53 = vpack.c.bf16 %v641_v50, %v640_v49 }
 0x1dd   : > { %v652_v54 = vpack.c.bf16 %v639_v52, %v638_v51  ;;  %v1318_v55 = vpop.f32.mrb[8].mxu1  ;;  %1391 = vmatpush3.bf16.msra.mxu0 %v1471_v23 }
 0x1de   : > { %v612_v56 = vadd.f32 %v1318_v55, %v1778_v18  ;;  %v603_v57 = vpop.f32.mrb[9].mxu1  ;;  %1392 = vmatprep.subr.bf16.mxu0 %v1472_v24 }
 0x1df   : > { %v604_v58 = vadd.f32 %v1778_v18, %v603_v57  ;;  %v1319_v59 = vpop.f32.mrb[10].mxu1  ;;  %1344 = vmatprep.mubr.bf16.mxu0 %v652_v54 }
 0x1e0   : > { %v615_v60 = vadd.f32 %v1319_v59, %v1778_v18  ;;  %v606_v61 = vpop.f32.mrb[11].mxu1  ;;  %1345 = vmatmul.mubr.bf16.gmra.mrb[20].mxu0 %v653_v53  ;;  %v644_v63 = vmax.f32 %v612_v56, 0.0 }
 0x1e1   : > { %v607_v62 = vadd.f32 %v1778_v18, %v606_v61  ;;  %v642_v4 = vmax.f32 %v604_v58, 0.0  ;;  %1393 = vmatpush3.bf16.msra.mxu0 %v1472_v24 }
 0x1e2   : > { %v645_v0 = vmax.f32 %v615_v60, 0.0  ;;  %1394 = vmatprep.subr.bf16.mxu0 %v1473_v13 }
 0x1e3   : > { %v643_v5 = vmax.f32 %v607_v62, 0.0 }
 0x1e4   : > { %v655_v1 = vpack.c.bf16 %v645_v0, %v644_v63 }
 0x1e5   : > { %v654_v6 = vpack.c.bf16 %v643_v5, %v642_v4  ;;  %v1322_v7 = vpop.f32.mrb[12].mxu1  ;;  %1395 = vmatpush3.bf16.msra.mxu0 %v1473_v13 }
 0x1e6   : > { %v628_v8 = vadd.f32 %v1322_v7, %v1778_v18  ;;  %v619_v9 = vpop.f32.mrb[13].mxu1  ;;  %1396 = vmatprep.subr.bf16.mxu0 %v1474_v25 }
 0x1e7   : > { %v620_v2 = vadd.f32 %v1778_v18, %v619_v9  ;;  %v1323_v10 = vpop.f32.mrb[14].mxu1  ;;  %1348 = vmatprep.mubr.bf16.mxu0 %v654_v6 }
 0x1e8   : > { %v631_v11 = vadd.f32 %v1323_v10, %v1778_v18  ;;  %v622_v12 = vpop.f32.mrb[15].mxu1  ;;  %1349 = vmatmul.mubr.bf16.gmra.mrb[24].mxu0 %v655_v1  ;;  %v648_v15 = vmax.f32 %v628_v8, 0.0 }
 0x1e9   : > { %v623_v14 = vadd.f32 %v1778_v18, %v622_v12  ;;  %v646_v17 = vmax.f32 %v620_v2, 0.0  ;;  %1397 = vmatpush3.bf16.msra.mxu0 %v1474_v25 }
 0x1ea   : > { %v649_v16 = vmax.f32 %v631_v11, 0.0  ;;  %1398 = vmatprep.subr.bf16.mxu0 %v1475_v26 }
 0x1eb   : > { %v647_v19 = vmax.f32 %v623_v14, 0.0 }
 0x1ec   : > { %v657_v3 = vpack.c.bf16 %v649_v16, %v648_v15 }
 0x1ed   : > { %v656_v20 = vpack.c.bf16 %v647_v19, %v646_v17  ;;  %1399 = vmatpush3.bf16.msra.mxu0 %v1475_v26 }
 0x1ef   : > { %1352 = vmatprep.mubr.bf16.mxu0 %v656_v20  ;;  %v1476_v20 = vld [vmem:[%s1933_s5 + $0x30] sm:$0xff]  }
 0x1f0   : > { %1353 = vmatmul.mubr.bf16.gmra.mrb[28].mxu0 %v657_v3  ;;  %1400 = vmatprep.subr.bf16.mxu0 %v1476_v20 }
 0x1f1   : > { %1401 = vmatpush3.bf16.msra.mxu0 %v1476_v20 }
 0x1f2   : > { %1402 = vmatprep.subr.bf16.mxu0 %v1477_v22 }
 0x1f5   : > { %1403 = vmatpush3.bf16.msra.mxu0 %v1477_v22 }
 0x2ab   : > { %v1342_v27 = vpop.f32.mrb[16].mxu0 }
 0x2ac   : > { %v701_v28 = vadd.f32 %v1342_v27, %v1778_v18  ;;  %v692_v29 = vpop.f32.mrb[17].mxu0 }
 0x2ad   : > { %v693_v30 = vadd.f32 %v1778_v18, %v692_v29  ;;  %v1343_v21 = vpop.f32.mrb[18].mxu0 }
 0x2ae   : > { %v704_v33 = vadd.f32 %v1343_v21, %v1778_v18  ;;  %v695_v34 = vpop.f32.mrb[19].mxu0  ;;  %v757_v31 = vmax.f32 %v701_v28, 0.0 }
 0x2af   : > { %v696_v35 = vadd.f32 %v1778_v18, %v695_v34  ;;  %v755_v37 = vmax.f32 %v693_v30, 0.0 }
 0x2b0   : > { %v758_v36 = vmax.f32 %v704_v33, 0.0 }
 0x2b1   : > { %v756_v32 = vmax.f32 %v696_v35, 0.0 }
 0x2b2   : > { %v772_v38 = vpack.c.bf16 %v758_v36, %v757_v31 }
 0x2b3   : > { %v771_v39 = vpack.c.bf16 %v756_v32, %v755_v37  ;;  %v1346_v40 = vpop.f32.mrb[20].mxu0 }
 0x2b4   : > { %v717_v41 = vadd.f32 %v1346_v40, %v1778_v18  ;;  %v708_v42 = vpop.f32.mrb[21].mxu0 }
 0x2b5   : > { %v709_v43 = vadd.f32 %v1778_v18, %v708_v42  ;;  %v1347_v44 = vpop.f32.mrb[22].mxu0  ;;  %1372 = vmatprep.mubr.bf16.mxu1 %v771_v39 }
 0x2b6   : > { %v720_v45 = vadd.f32 %v1347_v44, %v1778_v18  ;;  %v711_v46 = vpop.f32.mrb[23].mxu0  ;;  %1373 = vmatmul.mubr.bf16.vlgmr.msra.gmra.mrb[16].mxu1 %v772_v38  ;;  %v761_v48 = vmax.f32 %v717_v41, 0.0 }
 0x2b7   : > { %v712_v47 = vadd.f32 %v1778_v18, %v711_v46  ;;  %v759_v50 = vmax.f32 %v709_v43, 0.0 }
 0x2b8   : > { %v762_v49 = vmax.f32 %v720_v45, 0.0 }
 0x2b9   : > { %v760_v51 = vmax.f32 %v712_v47, 0.0 }
 0x2ba   : > { %v774_v52 = vpack.c.bf16 %v762_v49, %v761_v48 }
 0x2bb   : > { %v773_v53 = vpack.c.bf16 %v760_v51, %v759_v50  ;;  %v1350_v54 = vpop.f32.mrb[24].mxu0 }
 0x2bc   : > { %v733_v55 = vadd.f32 %v1350_v54, %v1778_v18  ;;  %v724_v56 = vpop.f32.mrb[25].mxu0 }
 0x2bd   : > { %v725_v57 = vadd.f32 %v1778_v18, %v724_v56  ;;  %v1351_v58 = vpop.f32.mrb[26].mxu0  ;;  %1376 = vmatprep.mubr.bf16.mxu1 %v773_v53 }
 0x2be   : > { %v736_v59 = vadd.f32 %v1351_v58, %v1778_v18  ;;  %v727_v60 = vpop.f32.mrb[27].mxu0  ;;  %1377 = vmatmul.mubr.bf16.gmra.mrb[20].mxu1 %v774_v52  ;;  %v765_v62 = vmax.f32 %v733_v55, 0.0 }
 0x2bf   : > { %v728_v61 = vadd.f32 %v1778_v18, %v727_v60  ;;  %v763_v0 = vmax.f32 %v725_v57, 0.0 }
 0x2c0   : > { %v766_v63 = vmax.f32 %v736_v59, 0.0 }
 0x2c1   : > { %v764_v4 = vmax.f32 %v728_v61, 0.0 }
 0x2c2   : > { %v776_v5 = vpack.c.bf16 %v766_v63, %v765_v62 }
 0x2c3   : > { %v775_v1 = vpack.c.bf16 %v764_v4, %v763_v0  ;;  %v1354_v6 = vpop.f32.mrb[28].mxu0 }
 0x2c4   : > { %v749_v7 = vadd.f32 %v1354_v6, %v1778_v18  ;;  %v740_v8 = vpop.f32.mrb[29].mxu0 }
 0x2c5   : > { %v741_v9 = vadd.f32 %v1778_v18, %v740_v8  ;;  %v1355_v2 = vpop.f32.mrb[30].mxu0  ;;  %1380 = vmatprep.mubr.bf16.mxu1 %v775_v1 }
 0x2c6   : > { %v752_v10 = vadd.f32 %v1355_v2, %v1778_v18  ;;  %v743_v11 = vpop.f32.mrb[31].mxu0  ;;  %1381 = vmatmul.mubr.bf16.gmra.mrb[24].mxu1 %v776_v5  ;;  %v769_v14 = vmax.f32 %v749_v7, 0.0 }
 0x2c7   : > { %v744_v12 = vadd.f32 %v1778_v18, %v743_v11  ;;  %v767_v16 = vmax.f32 %v741_v9, 0.0 }
 0x2c8   : > { %v770_v15 = vmax.f32 %v752_v10, 0.0 }
 0x2c9   : > { %v768_v17 = vmax.f32 %v744_v12, 0.0 }
 0x2ca   : > { %v778_v19 = vpack.c.bf16 %v770_v15, %v769_v14  ;;  %v1186_v15 = vld [vmem:[%s1934_s6] ss:$0 sm:$0xff] }
 0x2cb   : > { %v777_v3 = vpack.c.bf16 %v768_v17, %v767_v16 }
 0x2cd   : > { %1384 = vmatprep.mubr.bf16.mxu1 %v777_v3 }
 0x2ce   : > { %1385 = vmatmul.mubr.bf16.gmra.mrb[28].mxu1 %v778_v19 }
 0x389   : > { %v1374_v23 = vpop.f32.mrb[16].mxu1 }
 0x38a   : > { %v822_v24 = vadd.f32 %v1374_v23, %v1778_v18  ;;  %v813_v13 = vpop.f32.mrb[17].mxu1 }
 0x38b   : > { %v814_v25 = vadd.f32 %v1778_v18, %v813_v13  ;;  %v1375_v26 = vpop.f32.mrb[18].mxu1 }
 0x38c   : > { %v825_v27 = vadd.f32 %v1375_v26, %v1778_v18  ;;  %v816_v28 = vpop.f32.mrb[19].mxu1  ;;  %v878_v30 = vmax.f32 %v822_v24, 0.0 }
 0x38d   : > { %v817_v29 = vadd.f32 %v1778_v18, %v816_v28  ;;  %v876_v33 = vmax.f32 %v814_v25, 0.0 }
 0x38e   : > { %v879_v21 = vmax.f32 %v825_v27, 0.0 }
 0x38f   : > { %v877_v34 = vmax.f32 %v817_v29, 0.0 }
 0x390   : > { %v893_v35 = vpack.c.bf16 %v879_v21, %v878_v30 }
 0x391   : > { %v892_v31 = vpack.c.bf16 %v877_v34, %v876_v33  ;;  %v1378_v36 = vpop.f32.mrb[20].mxu1 }
 0x392   : > { %v838_v37 = vadd.f32 %v1378_v36, %v1778_v18  ;;  %v829_v32 = vpop.f32.mrb[21].mxu1 }
 0x393   : > { %v830_v38 = vadd.f32 %v1778_v18, %v829_v32  ;;  %v1379_v39 = vpop.f32.mrb[22].mxu1  ;;  %1404 = vmatprep.mubr.bf16.mxu0 %v892_v31 }
 0x394   : > { %v841_v40 = vadd.f32 %v1379_v39, %v1778_v18  ;;  %v832_v41 = vpop.f32.mrb[23].mxu1  ;;  %1405 = vmatmul.mubr.bf16.vlgmr.msra.gmra.mrb[32].mxu0 %v893_v35  ;;  %v882_v43 = vmax.f32 %v838_v37, 0.0 }
 0x395   : > { %v833_v42 = vadd.f32 %v1778_v18, %v832_v41  ;;  %v880_v45 = vmax.f32 %v830_v38, 0.0 }
 0x396   : > { %v883_v44 = vmax.f32 %v841_v40, 0.0 }
 0x397   : > { %v881_v46 = vmax.f32 %v833_v42, 0.0 }
 0x398   : > { %v895_v47 = vpack.c.bf16 %v883_v44, %v882_v43 }
 0x399   : > { %v894_v48 = vpack.c.bf16 %v881_v46, %v880_v45  ;;  %v1382_v49 = vpop.f32.mrb[24].mxu1 }
 0x39a   : > { %v854_v50 = vadd.f32 %v1382_v49, %v1778_v18  ;;  %v845_v51 = vpop.f32.mrb[25].mxu1 }
 0x39b   : > { %v846_v52 = vadd.f32 %v1778_v18, %v845_v51  ;;  %v1383_v53 = vpop.f32.mrb[26].mxu1  ;;  %1408 = vmatprep.mubr.bf16.mxu0 %v894_v48 }
 0x39c   : > { %v857_v54 = vadd.f32 %v1383_v53, %v1778_v18  ;;  %v848_v55 = vpop.f32.mrb[27].mxu1  ;;  %1409 = vmatmul.mubr.bf16.gmra.mrb[36].mxu0 %v895_v47  ;;  %v886_v57 = vmax.f32 %v854_v50, 0.0 }
 0x39d   : > { %v849_v56 = vadd.f32 %v1778_v18, %v848_v55  ;;  %v884_v59 = vmax.f32 %v846_v52, 0.0 }
 0x39e   : > { %v887_v58 = vmax.f32 %v857_v54, 0.0 }
 0x39f   : > { %v885_v60 = vmax.f32 %v849_v56, 0.0 }
 0x3a0   : > { %v897_v61 = vpack.c.bf16 %v887_v58, %v886_v57 }
 0x3a1   : > { %v896_v62 = vpack.c.bf16 %v885_v60, %v884_v59  ;;  %v1386_v63 = vpop.f32.mrb[28].mxu1 }
 0x3a2   : > { %v870_v0 = vadd.f32 %v1386_v63, %v1778_v18  ;;  %v861_v4 = vpop.f32.mrb[29].mxu1 }
 0x3a3   : > { %v862_v5 = vadd.f32 %v1778_v18, %v861_v4  ;;  %v1387_v1 = vpop.f32.mrb[30].mxu1  ;;  %1412 = vmatprep.mubr.bf16.mxu0 %v896_v62 }
 0x3a4   : > { %v873_v6 = vadd.f32 %v1387_v1, %v1778_v18  ;;  %v864_v7 = vpop.f32.mrb[31].mxu1  ;;  %1413 = vmatmul.mubr.bf16.gmra.mrb[40].mxu0 %v897_v61  ;;  %v890_v9 = vmax.f32 %v870_v0, 0.0 }
 0x3a5   : > { %v865_v8 = vadd.f32 %v1778_v18, %v864_v7  ;;  %v888_v10 = vmax.f32 %v862_v5, 0.0 }
 0x3a6   : > { %v891_v2 = vmax.f32 %v873_v6, 0.0 }
 0x3a7   : > { %v889_v11 = vmax.f32 %v865_v8, 0.0 }
 0x3a8   : > { %v899_v12 = vpack.c.bf16 %v891_v2, %v890_v9 }
 0x3a9   : > { %v898_v14 = vpack.c.bf16 %v889_v11, %v888_v10 }
 0x3ab   : > { %1416 = vmatprep.mubr.bf16.mxu0 %v898_v14 }
 0x3ac   : > { %1417 = vmatmul.mubr.bf16.gmra.mrb[44].mxu0 %v899_v12 }
 0x467   : > { %v1406_v16 = vpop.f32.mrb[32].mxu0 }
 0x468   : > { %v1014_v17 = vadd.f32 %v1406_v16, %v1186_v15  ;;  %v1005_v19 = vpop.f32.mrb[33].mxu0 }
 0x469   : > { %v1006_v3 = vadd.f32 %v1186_v15, %v1005_v19  ;;  %v1407_v18 = vpop.f32.mrb[34].mxu0 }
 0x46a   : > { %1070 = vst [vmem:[%s1858_s18 + $0x10] sm:$0xff] %v1014_v17  ;;  %v1017_v20 = vadd.f32 %v1407_v18, %v1186_v15  ;;  %v1008_v22 = vpop.f32.mrb[35].mxu0 }
 0x46b   : > { %1068 = vst [vmem:[%s1858_s18] sm:$0xff] %v1006_v3  ;;  %v1009_v23 = vadd.f32 %v1186_v15, %v1008_v22 }
 0x46c   : > { %1071 = vst [vmem:[%s1858_s18 + $0x18] sm:$0xff] %v1017_v20 }
 0x46d   : > { %1069 = vst [vmem:[%s1858_s18 + $0x8] sm:$0xff] %v1009_v23 }
 0x46f   : > { %v1410_v24 = vpop.f32.mrb[36].mxu0 }
 0x470   : > { %v1030_v13 = vadd.f32 %v1410_v24, %v1186_v15  ;;  %v1021_v25 = vpop.f32.mrb[37].mxu0 }
 0x471   : > { %v1022_v26 = vadd.f32 %v1186_v15, %v1021_v25  ;;  %v1411_v27 = vpop.f32.mrb[38].mxu0 }
 0x472   : > { %1074 = vst [vmem:[%s1858_s18 + $0x30] sm:$0xff] %v1030_v13  ;;  %v1033_v28 = vadd.f32 %v1411_v27, %v1186_v15  ;;  %v1024_v29 = vpop.f32.mrb[39].mxu0 }
 0x473   : > { %1072 = vst [vmem:[%s1858_s18 + $0x20] sm:$0xff] %v1022_v26  ;;  %v1025_v30 = vadd.f32 %v1186_v15, %v1024_v29 }
 0x474   : > { %1075 = vst [vmem:[%s1858_s18 + $0x38] sm:$0xff] %v1033_v28 }
 0x475   : > { %1073 = vst [vmem:[%s1858_s18 + $0x28] sm:$0xff] %v1025_v30 }
 0x477   : > { %v1414_v21 = vpop.f32.mrb[40].mxu0 }
 0x478   : > { %v1046_v33 = vadd.f32 %v1414_v21, %v1186_v15  ;;  %v1037_v34 = vpop.f32.mrb[41].mxu0 }
 0x479   : > { %v1038_v35 = vadd.f32 %v1186_v15, %v1037_v34  ;;  %v1415_v31 = vpop.f32.mrb[42].mxu0 }
 0x47a   : > { %1078 = vst [vmem:[%s1858_s18 + $0x50] sm:$0xff] %v1046_v33  ;;  %v1049_v36 = vadd.f32 %v1415_v31, %v1186_v15  ;;  %v1040_v37 = vpop.f32.mrb[43].mxu0 }
 0x47b   : > { %1076 = vst [vmem:[%s1858_s18 + $0x40] sm:$0xff] %v1038_v35  ;;  %v1041_v32 = vadd.f32 %v1186_v15, %v1040_v37 }
 0x47c   : > { %1079 = vst [vmem:[%s1858_s18 + $0x58] sm:$0xff] %v1049_v36 }
 0x47d   : > { %1077 = vst [vmem:[%s1858_s18 + $0x48] sm:$0xff] %v1041_v32 }
 0x47f   : > { %v1418_v38 = vpop.f32.mrb[44].mxu0 }
 0x480   : > { %v1062_v39 = vadd.f32 %v1418_v38, %v1186_v15  ;;  %v1053_v40 = vpop.f32.mrb[45].mxu0 }
 0x481   : > { %v1054_v41 = vadd.f32 %v1186_v15, %v1053_v40  ;;  %v1419_v42 = vpop.f32.mrb[46].mxu0 }
 0x482   : > { %1082 = vst [vmem:[%s1858_s18 + $0x70] sm:$0xff] %v1062_v39  ;;  %v1065_v43 = vadd.f32 %v1419_v42, %v1186_v15  ;;  %v1056_v44 = vpop.f32.mrb[47].mxu0 }
 0x483   : > { %1080 = vst [vmem:[%s1858_s18 + $0x60] sm:$0xff] %v1054_v41  ;;  %v1057_v45 = vadd.f32 %v1186_v15, %v1056_v44 }
 0x484   : > { %1083 = vst [vmem:[%s1858_s18 + $0x78] sm:$0xff] %v1065_v43 }
 0x485   : > { %1081 = vst [vmem:[%s1858_s18 + $0x68] sm:$0xff] %v1057_v45 }
 0x486   : > { %1491 = shalt.err (!%p1488_p3)
}
 0x487   : > { %s1492_s14 = scalar_lea.hbm %s1878_s23, 2048  ;;  %s1496_s17 = scalar_lea.hbm %s1935_s7, 4096 }
 0x488   : > { %p1493_p4 = scmp.ne.s32.totalorder %s1878_s23, %s1492_s14  ;;  %p1497_p9 = scmp.lt.u32.totalorder %s1878_s23, %s1935_s7 }
 0x489   : > { %p1498_p10 = scmp.lt.u32.totalorder %s1496_s17, %s1492_s14  ;;  %p1500_p12 = scmp.lt.u32.totalorder %s1492_s14, %s1878_s23 }
 0x48a   : > { %p1494_p7 = pnand %p1493_p4, %p1623_p5 }
 0x48b   : > { %p1499_p11 = por %p1498_p10, %p1497_p9 }
 0x48c   : > { %p1495_p8 = pneg %p1494_p7 }
 0x48d   : > { %p1501_p13 = por %p1500_p12, %p1499_p11 }
 0x48f   : > { %p1502_p0 = pnand %p1501_p13, %p1495_p8 }
 0x491   : > { %1505 = shalt.err (!%p1502_p0)
}
 0x492   : > { %s1543_s21 = smov 128   ;;  %s1544_s22 = smov 8  }
 0x493   : > { %1420 = dma.vmem_to_hbm [thread:$0]  (%p1623_p5), %s1880_s20, 2048, %s1878_s23, %s1887_s28, %s1543_s21, %s1543_s21, %s1544_s22  }
 0x494 PF: > { %p1426_p1 = scmp.ge.s32.totalorder %s1540_s27, 2  ;;  %s1113_s29 = sand.u32 1, %s1528_s24  }
 0x495   : > { %s1114_s8 = scalar_lea.sflag [#allocation3], %s1113_s29 }
 0x496   : > { %p1423_p2 = pnand %p1426_p1, %p1627_p6 }
 0x498   : > { %1523 = dma.done.wait (!%p1423_p2), %s1114_s8, 2048  }
 0x499   : > { %1525 = vsyncadd (!%p1423_p2), %s1114_s8, 4294965248  ;;  %p17_p3 = scmp.ge.s32.totalorder %s1610_s30, 4   ;;  %s1938_s24 = smov %s1532_s25 }
 0x49a   : > { %s1939_s25 = smov %s1536_s26  ;;  %s1940_s26 = smov %s1621_s10 }
 0x49b   : > { %s1941_s27 = smov %s1610_s30  ;;  %19 = sbr.rel (!%p17_p3) target bundleno = 3 (0x3), region = 83 }
 0x4a2   :  { %1119 = vsyncpa [#allocation3], 1 }
 0x4a3   :  { %1121 = vsyncpa [#allocation3 + $0x1], 1 }

</bundles_post_ra>
